<compile_context>
chip_gen: v6e
topology: v6e:2x2x1
jax: 0.10.0
libtpu: 0.0.40
codegen_flags: <defaults>
</compile_context>

<pallas_src>
import jax
import jax.numpy as jnp
from jax.experimental import pallas as pl
from jax.experimental.pallas import tpu as pltpu


_VMEM_BUDGET = 16 * 1024 * 1024  # target double-buffered live footprint / step
_TRAFFIC_SPLIT_BYTES = 4 * 1024 * 1024  # above this, prefer >=2 parallel steps


def _mul_add_cat_kernel(x6_ref, x4_ref, x12_ref, o_ref):
    # Input blocks (N, Rt, 128); output block (N, 3, Rt, 128).
    # Three full-tile, lane- and sublane-dense stores into the concatenated
    # channel slots; the fused mul+add on the middle channel is VPU filler
    # that hides under the DMA (this kernel is HBM-bound).
    o_ref[:, 0] = x4_ref[...]
    o_ref[:, 1] = x6_ref[...] * jnp.float32(0.448) + jnp.float32(
        -0.08799999999999997
    )
    o_ref[:, 2] = x12_ref[...]


def _divisors(x):
    ds = set()
    i = 1
    while i * i <= x:
        if x % i == 0:
            ds.add(i)
            ds.add(x // i)
        i += 1
    return sorted(ds)


def _choose_row_tile(rows, n):
    """Rows-per-step Rt for (N, Rt, 128) input / (N, 3, Rt, 128) output blocks.

    Exact footprint: 3 input + 3 output f32 planes, double-buffered
    -> 48 bytes per (row, lane) element -> 48 * n * Rt * 128 bytes live.
    Constraints: Rt divides rows; Rt % 8 == 0 or Rt == rows (sublane rule);
    footprint <= _VMEM_BUDGET; for large problems prefer >= 2 grid steps so
    the 'parallel' axis can shard across v7x's two TensorCores.
    """
    per_row_bytes = 48 * 128 * max(n, 1)
    max_rt = max(1, _VMEM_BUDGET // per_row_bytes)

    legal = [d for d in _divisors(rows) if d % 8 == 0 or d == rows]
    fitting = [d for d in legal if d <= max_rt] or [min(legal)]

    traffic_bytes = 24 * max(n, 1) * rows * 128  # bytes read + written
    want_steps = 2 if traffic_bytes > _TRAFFIC_SPLIT_BYTES else 1
    multi = [d for d in fitting if rows // d >= want_steps]
    return max(multi) if multi else max(fitting)


def mul_add_cat(x6, x4, x12):
    """Pallas TPU implementation of:
        x7 = x6 * 0.448
        x8 = x7 + (-0.08799999999999997)
        return cat((x4, x8, x12), dim=1)
    Inputs: (N, 1, H, W) float32 each.  Output: (N, 3, H, W) float32.
    """
    assert x6.shape == x4.shape == x12.shape
    assert x6.dtype == x4.dtype == x12.dtype
    n, c, h, w = x6.shape
    assert c == 1

    length = h * w

    # Fold spatial dims into (rows, 128) so every block is vreg-dense.
    l_pad = -(-length // 128) * 128
    rows = l_pad // 128
    # If the single full block would exceed the VMEM budget and rows cannot be
    # split on an 8-sublane boundary, pad rows up to a multiple of 8 so a
    # legal smaller tile always exists.
    if rows % 8 != 0 and 48 * n * rows * 128 > _VMEM_BUDGET:
        rows = -(-rows // 8) * 8
        l_pad = rows * 128

    def _to_rows(x):
        xf = x.reshape(n, length)
        if l_pad != length:
            xf = jnp.pad(xf, ((0, 0), (0, l_pad - length)))
        return xf.reshape(n, rows, 128)

    x6r, x4r, x12r = _to_rows(x6), _to_rows(x4), _to_rows(x12)

    rt = _choose_row_tile(rows, n)
    grid = (rows // rt,)

    in_spec = pl.BlockSpec((n, rt, 128), lambda j: (0, j, 0))
    out_spec = pl.BlockSpec((n, 3, rt, 128), lambda j: (0, 0, j, 0))

    out_rows = pl.pallas_call(
        _mul_add_cat_kernel,
        out_shape=jax.ShapeDtypeStruct((n, 3, rows, 128), x6.dtype),
        grid=grid,
        in_specs=[in_spec, in_spec, in_spec],
        out_specs=out_spec,
        compiler_params=pltpu.CompilerParams(
            dimension_semantics=("parallel",),
            vmem_limit_bytes=32 * 1024 * 1024,
        ),
    )(x6r, x4r, x12r)

    out = out_rows.reshape(n, 3, l_pad)
    if l_pad != length:
        out = out[:, :, :length]
    return out.reshape(n, 3, h, w)


def _reference(x6, x4, x12):
    return jnp.concatenate(
        [x4, x6 * jnp.float32(0.448) + jnp.float32(-0.08799999999999997), x12],
        axis=1,
    )


def _check(key, shape):
    k6, k4, k12 = jax.random.split(key, 3)
    x6 = jax.random.normal(k6, shape, dtype=jnp.float32)
    x4 = jax.random.normal(k4, shape, dtype=jnp.float32)
    x12 = jax.random.normal(k12, shape, dtype=jnp.float32)
    out = jax.block_until_ready(mul_add_cat(x6, x4, x12))
    ref = _reference(x6, x4, x12)
    n, _, h, w = shape
    assert out.shape == (n, 3, h, w)
    assert jnp.allclose(out, ref, atol=1e-6, rtol=1e-6)


if __name__ == "__main__":
    root = jax.random.PRNGKey(0)
    k0, k1, k2 = jax.random.split(root, 3)

    # Shape from the original module spec: (1, 1, 224, 224).
    # rows = 392 -> single dense (1, 392, 128) step, unmasked stores.
    _check(k0, (1, 1, 224, 224))

    # Robustness: batch > 1 and H*W not a multiple of 128
    # (exercises the lane-padding path in the wrapper).
    _check(k1, (2, 1, 16, 20))

    # Larger input: total traffic > 4 MiB -> >= 2 parallel grid steps,
    # so both v7x TensorCores can stream.
    _check(k2, (1, 1, 512, 512))

    print("KERNEL_OK")
</pallas_src>

<mosaic_0001>
module attributes {stable_mosaic.version = 11 : i64} {
  func.func @_mul_add_cat_kernel(%arg0: i32, %arg1: memref<1x392x128xf32, #tpu.memory_space<vmem>>, %arg2: memref<1x392x128xf32, #tpu.memory_space<vmem>>, %arg3: memref<1x392x128xf32, #tpu.memory_space<vmem>>, %arg4: memref<1x3x392x128xf32, #tpu.memory_space<vmem>>) attributes {dimension_semantics = [#tpu.dimension_semantics<parallel>], iteration_bounds = array<i64: 1>, scalar_prefetch = 0 : i64, scratch_operands = 0 : i64, tpu.core_type = #tpu.core_type<tc>, window_params = [{transform_indices = @transform_0, window_bounds = array<i64: 1, 392, 128>}, {transform_indices = @transform_1, window_bounds = array<i64: 1, 392, 128>}, {transform_indices = @transform_2, window_bounds = array<i64: 1, 392, 128>}, {transform_indices = @transform_3, window_bounds = array<i64: 1, 3, 392, 128>}]} {
    %c0 = arith.constant 0 : index
    %c0_0 = arith.constant 0 : index
    %c0_1 = arith.constant 0 : index
    %0 = vector.load %arg2[%c0, %c0_0, %c0_1] : memref<1x392x128xf32, #tpu.memory_space<vmem>>, vector<1x392x128xf32>
    %c0_2 = arith.constant 0 : index
    %c0_3 = arith.constant 0 : index
    %c0_4 = arith.constant 0 : index
    %c0_5 = arith.constant 0 : index
    %1 = vector.load %arg4[%c0_2, %c0_3, %c0_4, %c0_5] : memref<1x3x392x128xf32, #tpu.memory_space<vmem>>, vector<1x1x392x128xf32>
    %2 = vector.shape_cast %1 : vector<1x1x392x128xf32> to vector<1x392x128xf32>
    %3 = vector.shape_cast %0 : vector<1x392x128xf32> to vector<1x1x392x128xf32>
    tpu.vector_store %arg4[%c0_2, %c0_3, %c0_4, %c0_5], %3 {strides = array<i32>} : memref<1x3x392x128xf32, #tpu.memory_space<vmem>>, vector<1x1x392x128xf32>,
    %c0_6 = arith.constant 0 : index
    %c0_7 = arith.constant 0 : index
    %c0_8 = arith.constant 0 : index
    %4 = vector.load %arg1[%c0_6, %c0_7, %c0_8] : memref<1x392x128xf32, #tpu.memory_space<vmem>>, vector<1x392x128xf32>
    %cst = arith.constant 4.480000e-01 : f32
    %5 = vector.broadcast %cst : f32 to vector<1x392x128xf32>
    %6 = arith.mulf %4, %5 : vector<1x392x128xf32>
    %cst_9 = arith.constant -0.0879999995 : f32
    %7 = vector.broadcast %cst_9 : f32 to vector<1x392x128xf32>
    %8 = arith.addf %6, %7 : vector<1x392x128xf32>
    %c0_10 = arith.constant 0 : index
    %c1 = arith.constant 1 : index
    %c0_11 = arith.constant 0 : index
    %c0_12 = arith.constant 0 : index
    %9 = vector.load %arg4[%c0_10, %c1, %c0_11, %c0_12] : memref<1x3x392x128xf32, #tpu.memory_space<vmem>>, vector<1x1x392x128xf32>
    %10 = vector.shape_cast %9 : vector<1x1x392x128xf32> to vector<1x392x128xf32>
    %11 = vector.shape_cast %8 : vector<1x392x128xf32> to vector<1x1x392x128xf32>
    tpu.vector_store %arg4[%c0_10, %c1, %c0_11, %c0_12], %11 {strides = array<i32>} : memref<1x3x392x128xf32, #tpu.memory_space<vmem>>, vector<1x1x392x128xf32>,
    %c0_13 = arith.constant 0 : index
    %c0_14 = arith.constant 0 : index
    %c0_15 = arith.constant 0 : index
    %12 = vector.load %arg3[%c0_13, %c0_14, %c0_15] : memref<1x392x128xf32, #tpu.memory_space<vmem>>, vector<1x392x128xf32>
    %c0_16 = arith.constant 0 : index
    %c2 = arith.constant 2 : index
    %c0_17 = arith.constant 0 : index
    %c0_18 = arith.constant 0 : index
    %13 = vector.load %arg4[%c0_16, %c2, %c0_17, %c0_18] : memref<1x3x392x128xf32, #tpu.memory_space<vmem>>, vector<1x1x392x128xf32>
    %14 = vector.shape_cast %13 : vector<1x1x392x128xf32> to vector<1x392x128xf32>
    %15 = vector.shape_cast %12 : vector<1x392x128xf32> to vector<1x1x392x128xf32>
    tpu.vector_store %arg4[%c0_16, %c2, %c0_17, %c0_18], %15 {strides = array<i32>} : memref<1x3x392x128xf32, #tpu.memory_space<vmem>>, vector<1x1x392x128xf32>,
    return
  }
  func.func @transform_0(%arg0: i32) -> (i32, i32, i32) {
    %c0_i32 = arith.constant 0 : i32
    %c0_i32_0 = arith.constant 0 : i32
    %c0_i32_1 = arith.constant 0 : i32
    return %c0_i32, %arg0, %c0_i32_0 : i32, i32, i32
  }
  func.func @transform_1(%arg0: i32) -> (i32, i32, i32) {
    %c0_i32 = arith.constant 0 : i32
    %c0_i32_0 = arith.constant 0 : i32
    %c0_i32_1 = arith.constant 0 : i32
    return %c0_i32, %arg0, %c0_i32_0 : i32, i32, i32
  }
  func.func @transform_2(%arg0: i32) -> (i32, i32, i32) {
    %c0_i32 = arith.constant 0 : i32
    %c0_i32_0 = arith.constant 0 : i32
    %c0_i32_1 = arith.constant 0 : i32
    return %c0_i32, %arg0, %c0_i32_0 : i32, i32, i32
  }
  func.func @transform_3(%arg0: i32) -> (i32, i32, i32, i32) {
    %c0_i32 = arith.constant 0 : i32
    %c0_i32_0 = arith.constant 0 : i32
    %c0_i32_1 = arith.constant 0 : i32
    %c0_i32_2 = arith.constant 0 : i32
    return %c0_i32, %c0_i32_0, %arg0, %c0_i32_1 : i32, i32, i32, i32
  }
}

</mosaic_0001>

<bundles_post_ra>
// kernel: tpu_custom_call.1
= control target key start
LH: loop header
LB: loop body
LE: loop exit
PB: predicated region body
PF: predicated region fallthrough
CT: control target
= control target key end

     0   :  { %8 = vsyncpa [#allocation3], 0  ;;  %s610_s0 = inlined_call_operand.hbm [shape: f32[1,392,128], index: 0, kind: input, shape index: {}]   ;;  %s611_s1 = inlined_call_operand.hbm [shape: f32[1,392,128], index: 1, kind: input, shape index: {}]   ;;  %s612_s2 = inlined_call_operand.hbm [shape: f32[1,392,128], index: 2, kind: input, shape index: {}]   ;;  %s613_s3 = inlined_call_operand.hbm [shape: f32[1,3,392,128], index: 3, kind: output, shape index: {}]  }
   0x1   :  { %9 = vsyncpa [#allocation6], 0 }
   0x2   :  { %10 = vsyncpa [#allocation4], 0  ;;  %s560_s12 = smov [#allocation5]   ;;  %s561_s14 = smov [#allocation2]  }
   0x3   :  { %s28_s13 = sshll.u32 %s560_s12, 4  ;;  %s16_s15 = sshll.u32 %s561_s14, 4  ;;  %s29_s13 = int_to_ptr.vmem [resolvable:$true] %s28_s13  ;;  %s17_s15 = int_to_ptr.vmem [resolvable:$true] %s16_s15 }
   0x4   :  { %s482_s16 = scalar_lea.vmem %s29_s13, 6272  ;;  %p487_p1 = scmp.lt.s32.totalorder %s29_s13, %s29_s13 }
   0x5   :  { %p483_p0 = scmp.ne.s32.totalorder %s29_s13, %s482_s16  ;;  %p488_p2 = scmp.lt.s32.totalorder %s482_s16, %s482_s16 }
   0x7   :  { %p489_p3 = por %p488_p2, %p487_p1 }
   0x9   :  { %p490_p4 = pnand %p489_p3, %p483_p0 }
   0xb   :  { %493 = shalt.err (!%p490_p4)
}
   0xc   :  { %s562_s17 = smov 128   ;;  %s563_s18 = smov 8  }
   0xd   :  { %34 = dma.hbm_to_vmem [thread:$0]  %s611_s1, 6272, %s29_s13, [#allocation6], %s562_s17, %s562_s17, %s563_s18  }
   0xe   :  { %s502_s21 = scalar_lea.vmem %s17_s15, 6272  ;;  %p507_p6 = scmp.lt.s32.totalorder %s17_s15, %s17_s15 }
   0xf   :  { %p503_p5 = scmp.ne.s32.totalorder %s17_s15, %s502_s21  ;;  %p508_p7 = scmp.lt.s32.totalorder %s502_s21, %s502_s21 }
  0x11   :  { %p509_p8 = por %p508_p7, %p507_p6 }
  0x13   :  { %p510_p9 = pnand %p509_p8, %p503_p5 }
  0x15   :  { %513 = shalt.err (!%p510_p9)
}
  0x16   :  { %22 = dma.hbm_to_vmem [thread:$0]  %s610_s0, 6272, %s17_s15, [#allocation3], %s562_s17, %s562_s17, %s563_s18  }
  0x17   :  { %s564_s24 = smov [#allocation7]  }
  0x18   :  { %s40_s25 = sshll.u32 %s564_s24, 4  ;;  %s41_s25 = int_to_ptr.vmem [resolvable:$true] %s40_s25 }
  0x19   :  { %s522_s26 = scalar_lea.vmem %s41_s25, 6272  ;;  %p527_p11 = scmp.lt.s32.totalorder %s41_s25, %s41_s25 }
  0x1a   :  { %p523_p10 = scmp.ne.s32.totalorder %s41_s25, %s522_s26  ;;  %p528_p12 = scmp.lt.s32.totalorder %s522_s26, %s522_s26 }
  0x1c   :  { %p529_p13 = por %p528_p12, %p527_p11 }
  0x1e   :  { %p530_p0 = pnand %p529_p13, %p523_p10 }
  0x20   :  { %533 = shalt.err (!%p530_p0)
}
  0x21   :  { %46 = dma.hbm_to_vmem [thread:$0]  %s612_s2, 6272, %s41_s25, [#allocation6], %s562_s17, %s562_s17, %s563_s18  }
  0x22   :  { %554 = dma.done.wait [#allocation3], 6272  }
  0x23   :  { %555 = vsyncadd [#allocation3], 4294961024 }
  0x24   :  { %556 = dma.done.wait [#allocation6], 12544  }
  0x25   :  { %557 = vsyncadd [#allocation6], 4294954752  ;;  %v56_v0 = vld [vmem:[#allocation5] sm:$0xff]  ;;  %v57_v1 = vld [vmem:[#allocation5 + $0x8] sm:$0xff]  ;;  %s565_s0 = smov [#allocation8]  }
  0x26   :  { %v58_v2 = vld [vmem:[#allocation5 + $0x10] sm:$0xff]  ;;  %105 = vst [vmem:[#allocation8] sm:$0xff] %v56_v0  ;;  %106 = vst [vmem:[#allocation8 + $0x8] sm:$0xff] %v57_v1  ;;  %v59_v3 = vld [vmem:[#allocation5 + $0x18] sm:$0xff]  ;;  %s455_s2 = sshll.u32 %s565_s0, 4  ;;  %s456_s2 = int_to_ptr.vmem [resolvable:$true] %s455_s2 }
  0x27   :  { %107 = vst [vmem:[#allocation8 + $0x10] sm:$0xff] %v58_v2  ;;  %v60_v4 = vld [vmem:[#allocation5 + $0x20] sm:$0xff]  ;;  %v61_v5 = vld [vmem:[#allocation5 + $0x28] sm:$0xff]  ;;  %108 = vst [vmem:[#allocation8 + $0x18] sm:$0xff] %v59_v3  ;;  %s534_s28 = scalar_lea.vmem %s456_s2, 18816  ;;  %p539_p2 = scmp.lt.s32.totalorder %s456_s2, %s456_s2 }
  0x28   :  { %109 = vst [vmem:[#allocation8 + $0x20] sm:$0xff] %v60_v4  ;;  %110 = vst [vmem:[#allocation8 + $0x28] sm:$0xff] %v61_v5  ;;  %v62_v6 = vld [vmem:[#allocation5 + $0x30] sm:$0xff]  ;;  %v63_v7 = vld [vmem:[#allocation5 + $0x38] sm:$0xff]  ;;  %p535_p1 = scmp.ne.s32.totalorder %s456_s2, %s534_s28  ;;  %p540_p3 = scmp.lt.s32.totalorder %s534_s28, %s534_s28 }
  0x29   :  { %v64_v8 = vld [vmem:[#allocation5 + $0x40] sm:$0xff]  ;;  %111 = vst [vmem:[#allocation8 + $0x30] sm:$0xff] %v62_v6  ;;  %112 = vst [vmem:[#allocation8 + $0x38] sm:$0xff] %v63_v7  ;;  %v65_v9 = vld [vmem:[#allocation5 + $0x48] sm:$0xff] }
  0x2a   :  { %113 = vst [vmem:[#allocation8 + $0x40] sm:$0xff] %v64_v8  ;;  %v66_v10 = vld [vmem:[#allocation5 + $0x50] sm:$0xff]  ;;  %v67_v11 = vld [vmem:[#allocation5 + $0x58] sm:$0xff]  ;;  %114 = vst [vmem:[#allocation8 + $0x48] sm:$0xff] %v65_v9  ;;  %p541_p4 = por %p540_p3, %p539_p2 }
  0x2b   :  { %115 = vst [vmem:[#allocation8 + $0x50] sm:$0xff] %v66_v10  ;;  %116 = vst [vmem:[#allocation8 + $0x58] sm:$0xff] %v67_v11  ;;  %v68_v12 = vld [vmem:[#allocation5 + $0x60] sm:$0xff]  ;;  %v69_v13 = vld [vmem:[#allocation5 + $0x68] sm:$0xff] }
  0x2c   :  { %v70_v14 = vld [vmem:[#allocation5 + $0x70] sm:$0xff]  ;;  %117 = vst [vmem:[#allocation8 + $0x60] sm:$0xff] %v68_v12  ;;  %118 = vst [vmem:[#allocation8 + $0x68] sm:$0xff] %v69_v13  ;;  %v71_v15 = vld [vmem:[#allocation5 + $0x78] sm:$0xff]  ;;  %p542_p5 = pnand %p541_p4, %p535_p1 }
  0x2d   :  { %119 = vst [vmem:[#allocation8 + $0x70] sm:$0xff] %v70_v14  ;;  %v72_v16 = vld [vmem:[#allocation5 + $0x80] sm:$0xff]  ;;  %v73_v17 = vld [vmem:[#allocation5 + $0x88] sm:$0xff]  ;;  %120 = vst [vmem:[#allocation8 + $0x78] sm:$0xff] %v71_v15 }
  0x2e   :  { %121 = vst [vmem:[#allocation8 + $0x80] sm:$0xff] %v72_v16  ;;  %122 = vst [vmem:[#allocation8 + $0x88] sm:$0xff] %v73_v17  ;;  %v74_v18 = vld [vmem:[#allocation5 + $0x90] sm:$0xff]  ;;  %v75_v19 = vld [vmem:[#allocation5 + $0x98] sm:$0xff] }
  0x2f   :  { %v76_v20 = vld [vmem:[#allocation5 + $0xa0] sm:$0xff]  ;;  %123 = vst [vmem:[#allocation8 + $0x90] sm:$0xff] %v74_v18  ;;  %124 = vst [vmem:[#allocation8 + $0x98] sm:$0xff] %v75_v19  ;;  %v77_v21 = vld [vmem:[#allocation5 + $0xa8] sm:$0xff] }
  0x30   :  { %125 = vst [vmem:[#allocation8 + $0xa0] sm:$0xff] %v76_v20  ;;  %v78_v22 = vld [vmem:[#allocation5 + $0xb0] sm:$0xff]  ;;  %v79_v23 = vld [vmem:[#allocation5 + $0xb8] sm:$0xff]  ;;  %126 = vst [vmem:[#allocation8 + $0xa8] sm:$0xff] %v77_v21 }
  0x31   :  { %127 = vst [vmem:[#allocation8 + $0xb0] sm:$0xff] %v78_v22  ;;  %128 = vst [vmem:[#allocation8 + $0xb8] sm:$0xff] %v79_v23  ;;  %v80_v24 = vld [vmem:[#allocation5 + $0xc0] sm:$0xff]  ;;  %v81_v25 = vld [vmem:[#allocation5 + $0xc8] sm:$0xff] }
  0x32   :  { %v82_v26 = vld [vmem:[#allocation5 + $0xd0] sm:$0xff]  ;;  %129 = vst [vmem:[#allocation8 + $0xc0] sm:$0xff] %v80_v24  ;;  %130 = vst [vmem:[#allocation8 + $0xc8] sm:$0xff] %v81_v25  ;;  %v83_v27 = vld [vmem:[#allocation5 + $0xd8] sm:$0xff] }
  0x33   :  { %131 = vst [vmem:[#allocation8 + $0xd0] sm:$0xff] %v82_v26  ;;  %v84_v28 = vld [vmem:[#allocation5 + $0xe0] sm:$0xff]  ;;  %v85_v29 = vld [vmem:[#allocation5 + $0xe8] sm:$0xff]  ;;  %132 = vst [vmem:[#allocation8 + $0xd8] sm:$0xff] %v83_v27 }
  0x34   :  { %133 = vst [vmem:[#allocation8 + $0xe0] sm:$0xff] %v84_v28  ;;  %134 = vst [vmem:[#allocation8 + $0xe8] sm:$0xff] %v85_v29  ;;  %v86_v30 = vld [vmem:[#allocation5 + $0xf0] sm:$0xff]  ;;  %v87_v31 = vld [vmem:[#allocation5 + $0xf8] sm:$0xff] }
  0x35   :  { %v88_v32 = vld [vmem:[#allocation5 + $0x100] sm:$0xff]  ;;  %135 = vst [vmem:[#allocation8 + $0xf0] sm:$0xff] %v86_v30  ;;  %136 = vst [vmem:[#allocation8 + $0xf8] sm:$0xff] %v87_v31  ;;  %v89_v33 = vld [vmem:[#allocation5 + $0x108] sm:$0xff] }
  0x36   :  { %137 = vst [vmem:[#allocation8 + $0x100] sm:$0xff] %v88_v32  ;;  %v90_v34 = vld [vmem:[#allocation5 + $0x110] sm:$0xff]  ;;  %v91_v35 = vld [vmem:[#allocation5 + $0x118] sm:$0xff]  ;;  %138 = vst [vmem:[#allocation8 + $0x108] sm:$0xff] %v89_v33 }
  0x37   :  { %139 = vst [vmem:[#allocation8 + $0x110] sm:$0xff] %v90_v34  ;;  %140 = vst [vmem:[#allocation8 + $0x118] sm:$0xff] %v91_v35  ;;  %v92_v36 = vld [vmem:[#allocation5 + $0x120] sm:$0xff]  ;;  %v93_v37 = vld [vmem:[#allocation5 + $0x128] sm:$0xff] }
  0x38   :  { %v94_v38 = vld [vmem:[#allocation5 + $0x130] sm:$0xff]  ;;  %141 = vst [vmem:[#allocation8 + $0x120] sm:$0xff] %v92_v36  ;;  %142 = vst [vmem:[#allocation8 + $0x128] sm:$0xff] %v93_v37  ;;  %v95_v39 = vld [vmem:[#allocation5 + $0x138] sm:$0xff] }
  0x39   :  { %143 = vst [vmem:[#allocation8 + $0x130] sm:$0xff] %v94_v38  ;;  %v96_v40 = vld [vmem:[#allocation5 + $0x140] sm:$0xff]  ;;  %v97_v41 = vld [vmem:[#allocation5 + $0x148] sm:$0xff]  ;;  %144 = vst [vmem:[#allocation8 + $0x138] sm:$0xff] %v95_v39 }
  0x3a   :  { %145 = vst [vmem:[#allocation8 + $0x140] sm:$0xff] %v96_v40  ;;  %146 = vst [vmem:[#allocation8 + $0x148] sm:$0xff] %v97_v41  ;;  %v98_v42 = vld [vmem:[#allocation5 + $0x150] sm:$0xff]  ;;  %v99_v43 = vld [vmem:[#allocation5 + $0x158] sm:$0xff] }
  0x3b   :  { %v100_v44 = vld [vmem:[#allocation5 + $0x160] sm:$0xff]  ;;  %147 = vst [vmem:[#allocation8 + $0x150] sm:$0xff] %v98_v42  ;;  %148 = vst [vmem:[#allocation8 + $0x158] sm:$0xff] %v99_v43  ;;  %v101_v45 = vld [vmem:[#allocation5 + $0x168] sm:$0xff] }
  0x3c   :  { %149 = vst [vmem:[#allocation8 + $0x160] sm:$0xff] %v100_v44  ;;  %v102_v46 = vld [vmem:[#allocation5 + $0x170] sm:$0xff]  ;;  %v103_v47 = vld [vmem:[#allocation5 + $0x178] sm:$0xff]  ;;  %150 = vst [vmem:[#allocation8 + $0x168] sm:$0xff] %v101_v45 }
  0x3d   :  { %151 = vst [vmem:[#allocation8 + $0x170] sm:$0xff] %v102_v46  ;;  %152 = vst [vmem:[#allocation8 + $0x178] sm:$0xff] %v103_v47  ;;  %v104_v48 = vld [vmem:[#allocation5 + $0x180] sm:$0xff]  ;;  %v154_v49 = vld [vmem:[#allocation2] sm:$0xff] }
  0x3e   :  { %v155_v50 = vld [vmem:[#allocation2 + $0x8] sm:$0xff]  ;;  %153 = vst [vmem:[#allocation8 + $0x180] sm:$0xff] %v104_v48  ;;  %v203_v51 = vmul.f32 0.448, %v154_v49  ;;  %v156_v53 = vld [vmem:[#allocation2 + $0x10] sm:$0xff]  ;;  %v157_v54 = vld [vmem:[#allocation2 + $0x18] sm:$0xff] }
  0x3f   :  { %v204_v52 = vmul.f32 0.448, %v155_v50  ;;  %v205_v55 = vmul.f32 0.448, %v156_v53  ;;  %v206_v56 = vmul.f32 0.448, %v157_v54 }
  0x40   :  { %v158_v57 = vld [vmem:[#allocation2 + $0x20] sm:$0xff]  ;;  %v159_v58 = vld [vmem:[#allocation2 + $0x28] sm:$0xff]  ;;  %v252_v59 = vadd.f32 -0.088, %v203_v51  ;;  %v160_v2 = vld [vmem:[#allocation2 + $0x30] sm:$0xff] }
  0x41   :  { %v253_v60 = vadd.f32 -0.088, %v204_v52  ;;  %v207_v61 = vmul.f32 0.448, %v158_v57  ;;  %v254_v62 = vadd.f32 -0.088, %v205_v55 }
  0x42   :  { %v255_v63 = vadd.f32 -0.088, %v206_v56  ;;  %v208_v0 = vmul.f32 0.448, %v159_v58  ;;  %302 = vst [vmem:[#allocation8 + $0x188] sm:$0xff] %v252_v59  ;;  %v161_v3 = vld [vmem:[#allocation2 + $0x38] sm:$0xff] }
  0x43   :  { %303 = vst [vmem:[#allocation8 + $0x190] sm:$0xff] %v253_v60  ;;  %v256_v1 = vadd.f32 -0.088, %v207_v61  ;;  %v162_v4 = vld [vmem:[#allocation2 + $0x40] sm:$0xff]  ;;  %304 = vst [vmem:[#allocation8 + $0x198] sm:$0xff] %v254_v62  ;;  %v163_v9 = vld [vmem:[#allocation2 + $0x48] sm:$0xff] }
  0x44   :  { %305 = vst [vmem:[#allocation8 + $0x1a0] sm:$0xff] %v255_v63  ;;  %v257_v5 = vadd.f32 -0.088, %v208_v0  ;;  %v209_v6 = vmul.f32 0.448, %v160_v2  ;;  %v164_v10 = vld [vmem:[#allocation2 + $0x50] sm:$0xff] }
  0x45   :  { %v210_v7 = vmul.f32 0.448, %v161_v3  ;;  %306 = vst [vmem:[#allocation8 + $0x1a8] sm:$0xff] %v256_v1  ;;  %v211_v8 = vmul.f32 0.448, %v162_v4  ;;  %v165_v11 = vld [vmem:[#allocation2 + $0x58] sm:$0xff] }
  0x46   :  { %307 = vst [vmem:[#allocation8 + $0x1b0] sm:$0xff] %v257_v5  ;;  %v258_v12 = vadd.f32 -0.088, %v209_v6  ;;  %v212_v14 = vmul.f32 0.448, %v163_v9  ;;  %v166_v19 = vld [vmem:[#allocation2 + $0x60] sm:$0xff] }
  0x47   :  { %v259_v13 = vadd.f32 -0.088, %v210_v7  ;;  %v260_v15 = vadd.f32 -0.088, %v211_v8  ;;  %v213_v16 = vmul.f32 0.448, %v164_v10 }
  0x48   :  { %v214_v17 = vmul.f32 0.448, %v165_v11  ;;  %308 = vst [vmem:[#allocation8 + $0x1b8] sm:$0xff] %v258_v12  ;;  %v261_v18 = vadd.f32 -0.088, %v212_v14  ;;  %v167_v20 = vld [vmem:[#allocation2 + $0x68] sm:$0xff] }
  0x49   :  { %309 = vst [vmem:[#allocation8 + $0x1c0] sm:$0xff] %v259_v13  ;;  %v168_v21 = vld [vmem:[#allocation2 + $0x70] sm:$0xff]  ;;  %310 = vst [vmem:[#allocation8 + $0x1c8] sm:$0xff] %v260_v15  ;;  %v262_v22 = vadd.f32 -0.088, %v213_v16  ;;  %v169_v27 = vld [vmem:[#allocation2 + $0x78] sm:$0xff] }
  0x4a   :  { %v263_v23 = vadd.f32 -0.088, %v214_v17  ;;  %v215_v24 = vmul.f32 0.448, %v166_v19  ;;  %311 = vst [vmem:[#allocation8 + $0x1d0] sm:$0xff] %v261_v18  ;;  %v170_v28 = vld [vmem:[#allocation2 + $0x80] sm:$0xff] }
  0x4b   :  { %v216_v25 = vmul.f32 0.448, %v167_v20  ;;  %v217_v26 = vmul.f32 0.448, %v168_v21  ;;  %312 = vst [vmem:[#allocation8 + $0x1d8] sm:$0xff] %v262_v22  ;;  %v171_v34 = vld [vmem:[#allocation2 + $0x88] sm:$0xff] }
  0x4c   :  { %313 = vst [vmem:[#allocation8 + $0x1e0] sm:$0xff] %v263_v23  ;;  %v264_v29 = vadd.f32 -0.088, %v215_v24  ;;  %v218_v30 = vmul.f32 0.448, %v169_v27  ;;  %v172_v35 = vld [vmem:[#allocation2 + $0x90] sm:$0xff] }
  0x4d   :  { %v219_v31 = vmul.f32 0.448, %v170_v28  ;;  %v265_v32 = vadd.f32 -0.088, %v216_v25  ;;  %v266_v33 = vadd.f32 -0.088, %v217_v26 }
  0x4e   :  { %314 = vst [vmem:[#allocation8 + $0x1e8] sm:$0xff] %v264_v29  ;;  %v267_v36 = vadd.f32 -0.088, %v218_v30  ;;  %v220_v38 = vmul.f32 0.448, %v171_v34  ;;  %v173_v40 = vld [vmem:[#allocation2 + $0x98] sm:$0xff] }
  0x4f   :  { %v268_v37 = vadd.f32 -0.088, %v219_v31  ;;  %315 = vst [vmem:[#allocation8 + $0x1f0] sm:$0xff] %v265_v32  ;;  %316 = vst [vmem:[#allocation8 + $0x1f8] sm:$0xff] %v266_v33  ;;  %v221_v39 = vmul.f32 0.448, %v172_v35 }
  0x50   :  { %v174_v41 = vld [vmem:[#allocation2 + $0xa0] sm:$0xff]  ;;  %v175_v42 = vld [vmem:[#allocation2 + $0xa8] sm:$0xff]  ;;  %317 = vst [vmem:[#allocation8 + $0x200] sm:$0xff] %v267_v36  ;;  %v269_v43 = vadd.f32 -0.088, %v220_v38  ;;  %v176_v48 = vld [vmem:[#allocation2 + $0xb0] sm:$0xff] }
  0x51   :  { %318 = vst [vmem:[#allocation8 + $0x208] sm:$0xff] %v268_v37  ;;  %v222_v44 = vmul.f32 0.448, %v173_v40  ;;  %v223_v45 = vmul.f32 0.448, %v174_v41  ;;  %v177_v49 = vld [vmem:[#allocation2 + $0xb8] sm:$0xff] }
  0x52   :  { %v270_v46 = vadd.f32 -0.088, %v221_v39  ;;  %v224_v47 = vmul.f32 0.448, %v175_v42  ;;  %319 = vst [vmem:[#allocation8 + $0x210] sm:$0xff] %v269_v43  ;;  %v178_v55 = vld [vmem:[#allocation2 + $0xc0] sm:$0xff] }
  0x53   :  { %v271_v50 = vadd.f32 -0.088, %v222_v44  ;;  %v272_v51 = vadd.f32 -0.088, %v223_v45  ;;  %v225_v52 = vmul.f32 0.448, %v176_v48 }
  0x54   :  { %320 = vst [vmem:[#allocation8 + $0x218] sm:$0xff] %v270_v46  ;;  %v273_v53 = vadd.f32 -0.088, %v224_v47  ;;  %v226_v54 = vmul.f32 0.448, %v177_v49  ;;  %v179_v56 = vld [vmem:[#allocation2 + $0xc8] sm:$0xff] }
  0x55   :  { %321 = vst [vmem:[#allocation8 + $0x220] sm:$0xff] %v271_v50  ;;  %322 = vst [vmem:[#allocation8 + $0x228] sm:$0xff] %v272_v51  ;;  %v274_v57 = vadd.f32 -0.088, %v225_v52  ;;  %v227_v58 = vmul.f32 0.448, %v178_v55 }
  0x56   :  { %v228_v59 = vmul.f32 0.448, %v179_v56  ;;  %323 = vst [vmem:[#allocation8 + $0x230] sm:$0xff] %v273_v53  ;;  %v275_v60 = vadd.f32 -0.088, %v226_v54  ;;  %v180_v61 = vld [vmem:[#allocation2 + $0xd0] sm:$0xff] }
  0x57   :  { %v181_v62 = vld [vmem:[#allocation2 + $0xd8] sm:$0xff]  ;;  %v182_v63 = vld [vmem:[#allocation2 + $0xe0] sm:$0xff]  ;;  %324 = vst [vmem:[#allocation8 + $0x238] sm:$0xff] %v274_v57  ;;  %v276_v0 = vadd.f32 -0.088, %v227_v58  ;;  %v183_v5 = vld [vmem:[#allocation2 + $0xe8] sm:$0xff] }
  0x58   :  { %v277_v1 = vadd.f32 -0.088, %v228_v59  ;;  %v229_v2 = vmul.f32 0.448, %v180_v61  ;;  %325 = vst [vmem:[#allocation8 + $0x240] sm:$0xff] %v275_v60  ;;  %v184_v6 = vld [vmem:[#allocation2 + $0xf0] sm:$0xff] }
  0x59   :  { %v230_v3 = vmul.f32 0.448, %v181_v62  ;;  %v231_v4 = vmul.f32 0.448, %v182_v63  ;;  %326 = vst [vmem:[#allocation8 + $0x248] sm:$0xff] %v276_v0  ;;  %v185_v12 = vld [vmem:[#allocation2 + $0xf8] sm:$0xff] }
  0x5a   :  { %327 = vst [vmem:[#allocation8 + $0x250] sm:$0xff] %v277_v1  ;;  %v278_v7 = vadd.f32 -0.088, %v229_v2  ;;  %v232_v8 = vmul.f32 0.448, %v183_v5  ;;  %v186_v13 = vld [vmem:[#allocation2 + $0x100] sm:$0xff] }
  0x5b   :  { %v233_v9 = vmul.f32 0.448, %v184_v6  ;;  %v279_v10 = vadd.f32 -0.088, %v230_v3  ;;  %v280_v11 = vadd.f32 -0.088, %v231_v4 }
  0x5c   :  { %328 = vst [vmem:[#allocation8 + $0x258] sm:$0xff] %v278_v7  ;;  %v281_v14 = vadd.f32 -0.088, %v232_v8  ;;  %v234_v16 = vmul.f32 0.448, %v185_v12  ;;  %v187_v18 = vld [vmem:[#allocation2 + $0x108] sm:$0xff] }
  0x5d   :  { %v282_v15 = vadd.f32 -0.088, %v233_v9  ;;  %329 = vst [vmem:[#allocation8 + $0x260] sm:$0xff] %v279_v10  ;;  %330 = vst [vmem:[#allocation8 + $0x268] sm:$0xff] %v280_v11  ;;  %v235_v17 = vmul.f32 0.448, %v186_v13 }
  0x5e   :  { %v188_v19 = vld [vmem:[#allocation2 + $0x110] sm:$0xff]  ;;  %v189_v20 = vld [vmem:[#allocation2 + $0x118] sm:$0xff]  ;;  %331 = vst [vmem:[#allocation8 + $0x270] sm:$0xff] %v281_v14  ;;  %v283_v21 = vadd.f32 -0.088, %v234_v16  ;;  %v190_v26 = vld [vmem:[#allocation2 + $0x120] sm:$0xff] }
  0x5f   :  { %332 = vst [vmem:[#allocation8 + $0x278] sm:$0xff] %v282_v15  ;;  %v236_v22 = vmul.f32 0.448, %v187_v18  ;;  %v237_v23 = vmul.f32 0.448, %v188_v19  ;;  %v191_v27 = vld [vmem:[#allocation2 + $0x128] sm:$0xff] }
  0x60   :  { %v284_v24 = vadd.f32 -0.088, %v235_v17  ;;  %v238_v25 = vmul.f32 0.448, %v189_v20  ;;  %333 = vst [vmem:[#allocation8 + $0x280] sm:$0xff] %v283_v21  ;;  %v192_v33 = vld [vmem:[#allocation2 + $0x130] sm:$0xff] }
  0x61   :  { %v285_v28 = vadd.f32 -0.088, %v236_v22  ;;  %v286_v29 = vadd.f32 -0.088, %v237_v23  ;;  %v239_v30 = vmul.f32 0.448, %v190_v26 }
  0x62   :  { %334 = vst [vmem:[#allocation8 + $0x288] sm:$0xff] %v284_v24  ;;  %v287_v31 = vadd.f32 -0.088, %v238_v25  ;;  %v240_v32 = vmul.f32 0.448, %v191_v27  ;;  %v193_v34 = vld [vmem:[#allocation2 + $0x138] sm:$0xff] }
  0x63   :  { %335 = vst [vmem:[#allocation8 + $0x290] sm:$0xff] %v285_v28  ;;  %336 = vst [vmem:[#allocation8 + $0x298] sm:$0xff] %v286_v29  ;;  %v288_v35 = vadd.f32 -0.088, %v239_v30  ;;  %v241_v36 = vmul.f32 0.448, %v192_v33 }
  0x64   :  { %v242_v37 = vmul.f32 0.448, %v193_v34  ;;  %337 = vst [vmem:[#allocation8 + $0x2a0] sm:$0xff] %v287_v31  ;;  %v289_v38 = vadd.f32 -0.088, %v240_v32  ;;  %v194_v39 = vld [vmem:[#allocation2 + $0x140] sm:$0xff] }
  0x65   :  { %v195_v40 = vld [vmem:[#allocation2 + $0x148] sm:$0xff]  ;;  %v196_v41 = vld [vmem:[#allocation2 + $0x150] sm:$0xff]  ;;  %338 = vst [vmem:[#allocation8 + $0x2a8] sm:$0xff] %v288_v35  ;;  %v290_v42 = vadd.f32 -0.088, %v241_v36  ;;  %v197_v47 = vld [vmem:[#allocation2 + $0x158] sm:$0xff] }
  0x66   :  { %v291_v43 = vadd.f32 -0.088, %v242_v37  ;;  %v243_v44 = vmul.f32 0.448, %v194_v39  ;;  %339 = vst [vmem:[#allocation8 + $0x2b0] sm:$0xff] %v289_v38  ;;  %v198_v48 = vld [vmem:[#allocation2 + $0x160] sm:$0xff] }
  0x67   :  { %v244_v45 = vmul.f32 0.448, %v195_v40  ;;  %v245_v46 = vmul.f32 0.448, %v196_v41  ;;  %340 = vst [vmem:[#allocation8 + $0x2b8] sm:$0xff] %v290_v42  ;;  %v199_v54 = vld [vmem:[#allocation2 + $0x168] sm:$0xff] }
  0x68   :  { %341 = vst [vmem:[#allocation8 + $0x2c0] sm:$0xff] %v291_v43  ;;  %v292_v49 = vadd.f32 -0.088, %v243_v44  ;;  %v246_v50 = vmul.f32 0.448, %v197_v47  ;;  %v200_v55 = vld [vmem:[#allocation2 + $0x170] sm:$0xff] }
  0x69   :  { %v247_v51 = vmul.f32 0.448, %v198_v48  ;;  %v293_v52 = vadd.f32 -0.088, %v244_v45  ;;  %v294_v53 = vadd.f32 -0.088, %v245_v46 }
  0x6a   :  { %342 = vst [vmem:[#allocation8 + $0x2c8] sm:$0xff] %v292_v49  ;;  %v295_v56 = vadd.f32 -0.088, %v246_v50  ;;  %v248_v58 = vmul.f32 0.448, %v199_v54  ;;  %v201_v60 = vld [vmem:[#allocation2 + $0x178] sm:$0xff] }
  0x6b   :  { %v296_v57 = vadd.f32 -0.088, %v247_v51  ;;  %343 = vst [vmem:[#allocation8 + $0x2d0] sm:$0xff] %v293_v52  ;;  %344 = vst [vmem:[#allocation8 + $0x2d8] sm:$0xff] %v294_v53  ;;  %v249_v59 = vmul.f32 0.448, %v200_v55 }
  0x6c   :  { %v202_v61 = vld [vmem:[#allocation2 + $0x180] sm:$0xff]  ;;  %v351_v62 = vld [vmem:[#allocation7] sm:$0xff]  ;;  %345 = vst [vmem:[#allocation8 + $0x2e0] sm:$0xff] %v295_v56  ;;  %v297_v63 = vadd.f32 -0.088, %v248_v58  ;;  %v352_v3 = vld [vmem:[#allocation7 + $0x8] sm:$0xff] }
  0x6d   :  { %346 = vst [vmem:[#allocation8 + $0x2e8] sm:$0xff] %v296_v57  ;;  %v250_v0 = vmul.f32 0.448, %v201_v60  ;;  %v251_v1 = vmul.f32 0.448, %v202_v61  ;;  %401 = vst [vmem:[#allocation8 + $0x310] sm:$0xff] %v351_v62 }
  0x6e   :  { %v298_v2 = vadd.f32 -0.088, %v249_v59  ;;  %v353_v4 = vld [vmem:[#allocation7 + $0x10] sm:$0xff]  ;;  %v354_v5 = vld [vmem:[#allocation7 + $0x18] sm:$0xff]  ;;  %347 = vst [vmem:[#allocation8 + $0x2f0] sm:$0xff] %v297_v63  ;;  %402 = vst [vmem:[#allocation8 + $0x318] sm:$0xff] %v352_v3 }
  0x6f   :  { %v299_v6 = vadd.f32 -0.088, %v250_v0  ;;  %v300_v7 = vadd.f32 -0.088, %v251_v1  ;;  %403 = vst [vmem:[#allocation8 + $0x320] sm:$0xff] %v353_v4  ;;  %404 = vst [vmem:[#allocation8 + $0x328] sm:$0xff] %v354_v5 }
  0x70   :  { %v355_v8 = vld [vmem:[#allocation7 + $0x20] sm:$0xff]  ;;  %v356_v9 = vld [vmem:[#allocation7 + $0x28] sm:$0xff]  ;;  %348 = vst [vmem:[#allocation8 + $0x2f8] sm:$0xff] %v298_v2  ;;  %v357_v10 = vld [vmem:[#allocation7 + $0x30] sm:$0xff] }
  0x71   :  { %405 = vst [vmem:[#allocation8 + $0x330] sm:$0xff] %v355_v8  ;;  %406 = vst [vmem:[#allocation8 + $0x338] sm:$0xff] %v356_v9  ;;  %v358_v11 = vld [vmem:[#allocation7 + $0x38] sm:$0xff]  ;;  %v359_v12 = vld [vmem:[#allocation7 + $0x40] sm:$0xff] }
  0x72   :  { %349 = vst [vmem:[#allocation8 + $0x300] sm:$0xff] %v299_v6  ;;  %350 = vst [vmem:[#allocation8 + $0x308] sm:$0xff] %v300_v7  ;;  %v360_v13 = vld [vmem:[#allocation7 + $0x48] sm:$0xff]  ;;  %v361_v14 = vld [vmem:[#allocation7 + $0x50] sm:$0xff] }
  0x73   :  { %407 = vst [vmem:[#allocation8 + $0x340] sm:$0xff] %v357_v10  ;;  %408 = vst [vmem:[#allocation8 + $0x348] sm:$0xff] %v358_v11  ;;  %v362_v15 = vld [vmem:[#allocation7 + $0x58] sm:$0xff]  ;;  %v363_v16 = vld [vmem:[#allocation7 + $0x60] sm:$0xff] }
  0x74   :  { %409 = vst [vmem:[#allocation8 + $0x350] sm:$0xff] %v359_v12  ;;  %410 = vst [vmem:[#allocation8 + $0x358] sm:$0xff] %v360_v13  ;;  %v364_v17 = vld [vmem:[#allocation7 + $0x68] sm:$0xff]  ;;  %v365_v18 = vld [vmem:[#allocation7 + $0x70] sm:$0xff] }
  0x75   :  { %411 = vst [vmem:[#allocation8 + $0x360] sm:$0xff] %v361_v14  ;;  %412 = vst [vmem:[#allocation8 + $0x368] sm:$0xff] %v362_v15  ;;  %v366_v19 = vld [vmem:[#allocation7 + $0x78] sm:$0xff]  ;;  %v367_v20 = vld [vmem:[#allocation7 + $0x80] sm:$0xff] }
  0x76   :  { %413 = vst [vmem:[#allocation8 + $0x370] sm:$0xff] %v363_v16  ;;  %414 = vst [vmem:[#allocation8 + $0x378] sm:$0xff] %v364_v17  ;;  %v368_v21 = vld [vmem:[#allocation7 + $0x88] sm:$0xff]  ;;  %v369_v22 = vld [vmem:[#allocation7 + $0x90] sm:$0xff] }
  0x77   :  { %415 = vst [vmem:[#allocation8 + $0x380] sm:$0xff] %v365_v18  ;;  %416 = vst [vmem:[#allocation8 + $0x388] sm:$0xff] %v366_v19  ;;  %v370_v23 = vld [vmem:[#allocation7 + $0x98] sm:$0xff]  ;;  %v371_v24 = vld [vmem:[#allocation7 + $0xa0] sm:$0xff] }
  0x78   :  { %417 = vst [vmem:[#allocation8 + $0x390] sm:$0xff] %v367_v20  ;;  %418 = vst [vmem:[#allocation8 + $0x398] sm:$0xff] %v368_v21  ;;  %v372_v25 = vld [vmem:[#allocation7 + $0xa8] sm:$0xff]  ;;  %v373_v26 = vld [vmem:[#allocation7 + $0xb0] sm:$0xff] }
  0x79   :  { %419 = vst [vmem:[#allocation8 + $0x3a0] sm:$0xff] %v369_v22  ;;  %420 = vst [vmem:[#allocation8 + $0x3a8] sm:$0xff] %v370_v23  ;;  %v374_v27 = vld [vmem:[#allocation7 + $0xb8] sm:$0xff]  ;;  %v375_v28 = vld [vmem:[#allocation7 + $0xc0] sm:$0xff] }
  0x7a   :  { %421 = vst [vmem:[#allocation8 + $0x3b0] sm:$0xff] %v371_v24  ;;  %422 = vst [vmem:[#allocation8 + $0x3b8] sm:$0xff] %v372_v25  ;;  %v376_v29 = vld [vmem:[#allocation7 + $0xc8] sm:$0xff]  ;;  %v377_v30 = vld [vmem:[#allocation7 + $0xd0] sm:$0xff] }
  0x7b   :  { %423 = vst [vmem:[#allocation8 + $0x3c0] sm:$0xff] %v373_v26  ;;  %424 = vst [vmem:[#allocation8 + $0x3c8] sm:$0xff] %v374_v27  ;;  %v378_v31 = vld [vmem:[#allocation7 + $0xd8] sm:$0xff]  ;;  %v379_v32 = vld [vmem:[#allocation7 + $0xe0] sm:$0xff] }
  0x7c   :  { %425 = vst [vmem:[#allocation8 + $0x3d0] sm:$0xff] %v375_v28  ;;  %426 = vst [vmem:[#allocation8 + $0x3d8] sm:$0xff] %v376_v29  ;;  %v380_v33 = vld [vmem:[#allocation7 + $0xe8] sm:$0xff]  ;;  %v381_v34 = vld [vmem:[#allocation7 + $0xf0] sm:$0xff] }
  0x7d   :  { %427 = vst [vmem:[#allocation8 + $0x3e0] sm:$0xff] %v377_v30  ;;  %428 = vst [vmem:[#allocation8 + $0x3e8] sm:$0xff] %v378_v31  ;;  %v382_v35 = vld [vmem:[#allocation7 + $0xf8] sm:$0xff]  ;;  %v383_v36 = vld [vmem:[#allocation7 + $0x100] sm:$0xff] }
  0x7e   :  { %429 = vst [vmem:[#allocation8 + $0x3f0] sm:$0xff] %v379_v32  ;;  %430 = vst [vmem:[#allocation8 + $0x3f8] sm:$0xff] %v380_v33  ;;  %v384_v37 = vld [vmem:[#allocation7 + $0x108] sm:$0xff]  ;;  %v385_v38 = vld [vmem:[#allocation7 + $0x110] sm:$0xff] }
  0x7f   :  { %431 = vst [vmem:[#allocation8 + $0x400] sm:$0xff] %v381_v34  ;;  %432 = vst [vmem:[#allocation8 + $0x408] sm:$0xff] %v382_v35  ;;  %v386_v39 = vld [vmem:[#allocation7 + $0x118] sm:$0xff]  ;;  %v387_v40 = vld [vmem:[#allocation7 + $0x120] sm:$0xff] }
  0x80   :  { %433 = vst [vmem:[#allocation8 + $0x410] sm:$0xff] %v383_v36  ;;  %434 = vst [vmem:[#allocation8 + $0x418] sm:$0xff] %v384_v37  ;;  %v388_v41 = vld [vmem:[#allocation7 + $0x128] sm:$0xff]  ;;  %v389_v42 = vld [vmem:[#allocation7 + $0x130] sm:$0xff] }
  0x81   :  { %435 = vst [vmem:[#allocation8 + $0x420] sm:$0xff] %v385_v38  ;;  %436 = vst [vmem:[#allocation8 + $0x428] sm:$0xff] %v386_v39  ;;  %v390_v43 = vld [vmem:[#allocation7 + $0x138] sm:$0xff]  ;;  %v391_v44 = vld [vmem:[#allocation7 + $0x140] sm:$0xff] }
  0x82   :  { %437 = vst [vmem:[#allocation8 + $0x430] sm:$0xff] %v387_v40  ;;  %438 = vst [vmem:[#allocation8 + $0x438] sm:$0xff] %v388_v41  ;;  %v392_v45 = vld [vmem:[#allocation7 + $0x148] sm:$0xff]  ;;  %v393_v46 = vld [vmem:[#allocation7 + $0x150] sm:$0xff] }
  0x83   :  { %439 = vst [vmem:[#allocation8 + $0x440] sm:$0xff] %v389_v42  ;;  %440 = vst [vmem:[#allocation8 + $0x448] sm:$0xff] %v390_v43  ;;  %v394_v47 = vld [vmem:[#allocation7 + $0x158] sm:$0xff]  ;;  %v395_v48 = vld [vmem:[#allocation7 + $0x160] sm:$0xff] }
  0x84   :  { %441 = vst [vmem:[#allocation8 + $0x450] sm:$0xff] %v391_v44  ;;  %442 = vst [vmem:[#allocation8 + $0x458] sm:$0xff] %v392_v45  ;;  %v396_v49 = vld [vmem:[#allocation7 + $0x168] sm:$0xff]  ;;  %v397_v50 = vld [vmem:[#allocation7 + $0x170] sm:$0xff] }
  0x85   :  { %443 = vst [vmem:[#allocation8 + $0x460] sm:$0xff] %v393_v46  ;;  %444 = vst [vmem:[#allocation8 + $0x468] sm:$0xff] %v394_v47  ;;  %v398_v51 = vld [vmem:[#allocation7 + $0x178] sm:$0xff]  ;;  %v399_v52 = vld [vmem:[#allocation7 + $0x180] sm:$0xff] }
  0x86   :  { %445 = vst [vmem:[#allocation8 + $0x470] sm:$0xff] %v395_v48  ;;  %446 = vst [vmem:[#allocation8 + $0x478] sm:$0xff] %v396_v49 }
  0x87   :  { %447 = vst [vmem:[#allocation8 + $0x480] sm:$0xff] %v397_v50  ;;  %448 = vst [vmem:[#allocation8 + $0x488] sm:$0xff] %v398_v51 }
  0x88   :  { %449 = vst [vmem:[#allocation8 + $0x490] sm:$0xff] %v399_v52 }
  0x89   :  { %545 = shalt.err (!%p542_p5)
}
  0x8a   :  { %461 = dma.vmem_to_hbm [thread:$0]  %s456_s2, 18816, %s613_s3, [#allocation4], %s562_s17, %s562_s17, %s563_s18  }
  0x8b   :  { %558 = dma.done.wait [#allocation4], 18816  }
  0x8c   :  { %559 = vsyncadd [#allocation4], 4294948480 }
  0x8d   :  { %465 = vsyncpa [#allocation3], 1 }
  0x8e   :  { %466 = vsyncpa [#allocation6], 1 }
  0x8f   :  { %467 = vsyncpa [#allocation4], 1 }

</bundles_post_ra>
